<compile_context>
chip_gen: v7x
topology: tpu7x:2x2x1
jax: 0.10.0
libtpu: 0.0.40
codegen_flags: <defaults>
</compile_context>

<pallas_src>
import functools

import jax
import jax.numpy as jnp
from jax.experimental import pallas as pl
from jax.experimental.pallas import tpu as pltpu


def _round_up(x, m):
    return (x + m - 1) // m * m


def _csq_loss_kernel(ht_ref, u_ref, lab_ref, out_ref, *, n_valid, ragged):
    # ht_ref : (bit, C)  resident +/-1 hash centers (transposed; tiny)
    # u_ref  : (tn, bit) raw logits tile, natural HBM layout (contiguous DMA)
    # lab_ref: (1, tn)   int32 class ids, lane-dense
    # out_ref: (2, tn)   row 0 = per-sample BCE sums, row 1 = per-sample Q sums
    tn = u_ref.shape[0]
    n_class = ht_ref.shape[1]

    # Lane-dense compute layout: batch on the 128-lane axis.  The transpose
    # runs in-kernel (XLU) so the wrapper never materializes u^T in HBM.
    u = jnp.transpose(u_ref[...].astype(jnp.float32))          # (bit, tn) f32

    # hash-center gather: rebuild the one-hot from int labels, then a tiny
    # f32 x f32 matmul on the MXU (exact: operands are 0/1 and +/-1).
    lab = lab_ref[...]                                          # (1, tn) int32
    cls = jax.lax.broadcasted_iota(jnp.int32, (n_class, tn), 0)
    onehot = (cls == lab).astype(jnp.float32)                   # (C, tn)
    hc = jnp.dot(ht_ref[...], onehot,
                 preferred_element_type=jnp.float32)            # (bit, tn)

    # BCE(0.5*(tanh u + 1), 0.5*(hc + 1)) == clamped softplus(-2*u*hc).
    a = 2.0 * jnp.abs(u)
    e = jnp.exp(-a)                                             # EUP
    log1pe = jnp.log(1.0 + e)                                   # EUP
    m = -2.0 * (u * hc)
    bce = jnp.minimum(jnp.maximum(m, 0.0) + log1pe, 100.0)

    # Quantization term, division-free (reuses a and log1pe, no reciprocal).
    s = 2.0 * jnp.exp(-(a + log1pe))                            # EUP
    q = s * s

    bce_sum = jnp.sum(bce, axis=0, keepdims=True)               # (1, tn)
    q_sum = jnp.sum(q, axis=0, keepdims=True)                   # (1, tn)

    if ragged:
        # Zero the padded tail lanes.  Padded block regions may hold arbitrary
        # (even NaN/Inf) data, so mask with where (select), never multiply.
        lane = (pl.program_id(0) * tn
                + jax.lax.broadcasted_iota(jnp.int32, (1, tn), 1))
        valid = lane < n_valid
        bce_sum = jnp.where(valid, bce_sum, 0.0)
        q_sum = jnp.where(valid, q_sum, 0.0)

    # Single fused, lane-dense store of both partial-sum rows.
    rowsel = jax.lax.broadcasted_iota(jnp.int32, (2, tn), 0)
    out_ref[...] = jnp.where(rowsel == 0, bce_sum, q_sum)


@functools.partial(jax.jit, static_argnames=("tile_n",))
def csq_loss(u, y, hash_targets, tile_n=8192):
    """CSQ loss forward: BCE-to-hash-center + 1e-4 * quantization loss.

    u            : (N, bit) raw hash logits (f32 or bf16; bf16 is passed
                   straight to the kernel and upcast after the DMA).
    y            : (N, n_class) one-/multi-hot labels, or (N,) int class ids.
    hash_targets : (n_class, bit) +/-1 hash centers.
    """
    n, bit = u.shape
    ht_t = hash_targets.astype(jnp.float32).T                   # (bit, C) tiny
    n_class = ht_t.shape[1]

    if u.dtype not in (jnp.float32, jnp.bfloat16):
        u = u.astype(jnp.float32)

    # torch label2center uses y.argmax(axis=1) (first max on ties); reduce the
    # label input to an int32 row so the kernel never reads the one-hot matrix.
    if y.ndim == 2:
        labels = jnp.argmax(y, axis=1)
    else:
        labels = y
    labels = labels.astype(jnp.int32).reshape(1, n)             # lane-dense

    # Batch tile: multiple of 128 lanes, capped so small batches use one block.
    tn = min(_round_up(int(tile_n), 128), _round_up(n, 128))
    grid = pl.cdiv(n, tn)
    ragged = (n % tn) != 0

    kernel = functools.partial(_csq_loss_kernel, n_valid=n, ragged=ragged)

    partial = pl.pallas_call(
        kernel,
        out_shape=jax.ShapeDtypeStruct((2, grid * tn), jnp.float32),
        grid_spec=pltpu.PrefetchScalarGridSpec(
            num_scalar_prefetch=0,
            grid=(grid,),
            in_specs=[
                pl.BlockSpec((bit, n_class), lambda i: (0, 0)),  # resident
                pl.BlockSpec((tn, bit), lambda i: (i, 0)),       # natural u
                pl.BlockSpec((1, tn), lambda i: (0, i)),         # int labels
            ],
            out_specs=pl.BlockSpec((2, tn), lambda i: (0, i)),
        ),
        compiler_params=pltpu.CompilerParams(
            # TODO(synk): verify with a trace that the batch axis is split
            # across both TensorCores on v7x; shard explicitly if not.
            dimension_semantics=("parallel",),
            vmem_limit_bytes=32 * 1024 * 1024,
        ),
    )(ht_t, u, labels)

    # Padded lanes are zeroed in-kernel, so the full reduce is safe.
    denom = jnp.float32(n * bit)
    center_loss = jnp.sum(partial[0]) / denom
    q_loss = jnp.sum(partial[1]) / denom
    return center_loss + 1e-4 * q_loss


def hadamard(n):
    """Sylvester Hadamard matrix (n must be a power of two)."""
    H = jnp.array([[1.0]], dtype=jnp.float32)
    while H.shape[0] < n:
        H = jnp.concatenate(
            [jnp.concatenate([H, H], axis=1),
             jnp.concatenate([H, -H], axis=1)],
            axis=0,
        )
    return H


def get_hash_targets(n_class, bit):
    # Deterministic replica of CSQLoss.get_hash_targets for n_class <= 2*bit.
    # TODO(synk): the random repair loop for n_class > 2*bit is host-side
    # module init (not part of the forward pass) and is not reproduced.
    H_K = hadamard(bit)
    H_2K = jnp.concatenate([H_K, -H_K], axis=0)
    return H_2K[:n_class].astype(jnp.float32)


def _reference(u, y, hash_targets):
    # Pure-JAX replica of the torch forward (tanh + clamped-log BCE).
    u_t = jnp.tanh(u)
    hc = hash_targets[jnp.argmax(y, axis=1)]
    p = 0.5 * (u_t + 1.0)
    t = 0.5 * (hc + 1.0)
    bce = jnp.mean(-(t * jnp.maximum(jnp.log(p), -100.0)
                     + (1.0 - t) * jnp.maximum(jnp.log(1.0 - p), -100.0)))
    return bce + 1e-4 * jnp.mean((jnp.abs(u_t) - 1.0) ** 2)


if __name__ == "__main__":
    batch, n_class, bit = 8, 8, 32

    key = jax.random.PRNGKey(0)
    k_u, k_y, k_u2, k_y2 = jax.random.split(key, 4)

    u = jax.random.normal(k_u, (batch, bit), dtype=jnp.float32)
    labels = jax.random.randint(k_y, (batch,), 0, n_class)
    y = jax.nn.one_hot(labels, n_class, dtype=jnp.float32)
    hash_targets = get_hash_targets(n_class, bit)

    loss = csq_loss(u, y, hash_targets)
    jax.block_until_ready(loss)
    ref = _reference(u, y, hash_targets)
    assert jnp.allclose(loss, ref, rtol=1e-4, atol=1e-4), (loss, ref)

    # Second check: multi-tile grid with a ragged tail (no jnp.pad anywhere).
    batch2 = 300
    u2 = jax.random.normal(k_u2, (batch2, bit), dtype=jnp.float32)
    labels2 = jax.random.randint(k_y2, (batch2,), 0, n_class)
    y2 = jax.nn.one_hot(labels2, n_class, dtype=jnp.float32)
    loss2 = csq_loss(u2, y2, hash_targets, tile_n=128)
    jax.block_until_ready(loss2)
    ref2 = _reference(u2, y2, hash_targets)
    assert jnp.allclose(loss2, ref2, rtol=1e-4, atol=1e-4), (loss2, ref2)

    print("KERNEL_OK")
</pallas_src>

<mosaic_0001>
module attributes {stable_mosaic.version = 11 : i64} {
  func.func @_csq_loss_kernel(%arg0: i32, %arg1: memref<32x8xf32, #tpu.memory_space<vmem>>, %arg2: memref<128x32xf32, #tpu.memory_space<vmem>>, %arg3: memref<1x128xi32, #tpu.memory_space<vmem>>, %arg4: memref<2x128xf32, #tpu.memory_space<vmem>>) attributes {dimension_semantics = [#tpu.dimension_semantics<parallel>], iteration_bounds = array<i64: 1>, scalar_prefetch = 0 : i64, scratch_operands = 0 : i64, tpu.core_type = #tpu.core_type<tc>, window_params = [{pipeline_mode = #tpu.pipeline_mode<synchronous>, transform_indices = @transform_0, window_bounds = array<i64: 32, 8>}, {transform_indices = @transform_1, window_bounds = array<i64: 128, 32>}, {transform_indices = @transform_2, window_bounds = array<i64: 1, 128>}, {transform_indices = @transform_3, window_bounds = array<i64: 2, 128>}]} {
    %c0 = arith.constant 0 : index
    %c0_0 = arith.constant 0 : index
    %0 = vector.load %arg2[%c0, %c0_0] : memref<128x32xf32, #tpu.memory_space<vmem>>, vector<128x32xf32>
    %1 = tpu.transpose %0, [1, 0] : vector<128x32xf32> -> vector<32x128xf32>
    %c0_1 = arith.constant 0 : index
    %c0_2 = arith.constant 0 : index
    %2 = vector.load %arg3[%c0_1, %c0_2] : memref<1x128xi32, #tpu.memory_space<vmem>>, vector<1x128xi32>
    %3 = tpu.iota {dimensions = array<i32: 0>} : vector<8x128xi32>
    %4 = vector.broadcast %2 : vector<1x128xi32> to vector<8x128xi32>
    %5 = arith.cmpi eq, %3, %4 : vector<8x128xi32>
    %6 = arith.extui %5 : vector<8x128xi1> to vector<8x128xi32>
    %7 = arith.sitofp %6 : vector<8x128xi32> to vector<8x128xf32>
    %c0_3 = arith.constant 0 : index
    %c0_4 = arith.constant 0 : index
    %8 = vector.load %arg1[%c0_3, %c0_4] : memref<32x8xf32, #tpu.memory_space<vmem>>, vector<32x8xf32>
    %cst = arith.constant dense<0.000000e+00> : vector<32x128xf32>
    %9 = tpu.matmul %8, %7, %cst {dimension_numbers = #tpu.dot_dimension_numbers<[1], [0], [0], [1], [0, 0, 1, 1], [], []>} : vector<32x8xf32>, vector<8x128xf32>, vector<32x128xf32> -> vector<32x128xf32>
    %10 = math.absf %1 : vector<32x128xf32>
    %cst_5 = arith.constant 2.000000e+00 : f32
    %11 = vector.broadcast %cst_5 : f32 to vector<32x128xf32>
    %12 = arith.mulf %11, %10 : vector<32x128xf32>
    %cst_6 = arith.constant 0.000000e+00 : f32
    %13 = vector.broadcast %cst_6 : f32 to vector<32x128xf32>
    %14 = arith.subf %13, %12 : vector<32x128xf32>
    %15 = math.exp %14 : vector<32x128xf32>
    %cst_7 = arith.constant 1.000000e+00 : f32
    %16 = vector.broadcast %cst_7 : f32 to vector<32x128xf32>
    %17 = arith.addf %16, %15 : vector<32x128xf32>
    %18 = math.log %17 : vector<32x128xf32>
    %19 = arith.mulf %1, %9 : vector<32x128xf32>
    %cst_8 = arith.constant -2.000000e+00 : f32
    %20 = vector.broadcast %cst_8 : f32 to vector<32x128xf32>
    %21 = arith.mulf %20, %19 : vector<32x128xf32>
    %cst_9 = arith.constant 0.000000e+00 : f32
    %22 = vector.broadcast %cst_9 : f32 to vector<32x128xf32>
    %23 = arith.maximumf %21, %22 : vector<32x128xf32>
    %24 = arith.addf %23, %18 : vector<32x128xf32>
    %cst_10 = arith.constant 1.000000e+02 : f32
    %25 = vector.broadcast %cst_10 : f32 to vector<32x128xf32>
    %26 = arith.minimumf %24, %25 : vector<32x128xf32>
    %27 = arith.addf %12, %18 : vector<32x128xf32>
    %cst_11 = arith.constant 0.000000e+00 : f32
    %28 = vector.broadcast %cst_11 : f32 to vector<32x128xf32>
    %29 = arith.subf %28, %27 : vector<32x128xf32>
    %30 = math.exp %29 : vector<32x128xf32>
    %cst_12 = arith.constant 2.000000e+00 : f32
    %31 = vector.broadcast %cst_12 : f32 to vector<32x128xf32>
    %32 = arith.mulf %31, %30 : vector<32x128xf32>
    %33 = arith.mulf %32, %32 : vector<32x128xf32>
    %cst_13 = arith.constant dense<0.000000e+00> : vector<128xf32>
    %34 = vector.multi_reduction <add>, %26, %cst_13 [0] : vector<32x128xf32> to vector<128xf32>
    %35 = vector.shape_cast %34 : vector<128xf32> to vector<1x128xf32>
    %cst_14 = arith.constant dense<0.000000e+00> : vector<128xf32>
    %36 = vector.multi_reduction <add>, %33, %cst_14 [0] : vector<32x128xf32> to vector<128xf32>
    %37 = vector.shape_cast %36 : vector<128xf32> to vector<1x128xf32>
    %c128_i32 = arith.constant 128 : i32
    %38 = arith.muli %arg0, %c128_i32 : i32
    %39 = tpu.iota {dimensions = array<i32: 1>} : vector<1x128xi32>
    %40 = vector.broadcast %38 : i32 to vector<1x128xi32>
    %41 = arith.addi %40, %39 : vector<1x128xi32>
    %c8_i32 = arith.constant 8 : i32
    %42 = vector.broadcast %c8_i32 : i32 to vector<1x128xi32>
    %43 = arith.cmpi slt, %41, %42 : vector<1x128xi32>
    %cst_15 = arith.constant 0.000000e+00 : f32
    %44 = vector.broadcast %cst_15 : f32 to vector<1x128xf32>
    %45 = arith.select %43, %35, %44 : vector<1x128xi1>, vector<1x128xf32>
    %cst_16 = arith.constant 0.000000e+00 : f32
    %46 = vector.broadcast %cst_16 : f32 to vector<1x128xf32>
    %47 = arith.select %43, %37, %46 : vector<1x128xi1>, vector<1x128xf32>
    %48 = tpu.iota {dimensions = array<i32: 0>} : vector<2x128xi32>
    %c0_i32 = arith.constant 0 : i32
    %49 = vector.broadcast %c0_i32 : i32 to vector<2x128xi32>
    %50 = arith.cmpi eq, %48, %49 : vector<2x128xi32>
    %51 = vector.shape_cast %45 : vector<1x128xf32> to vector<1x128xf32>
    %52 = vector.broadcast %51 : vector<1x128xf32> to vector<2x128xf32>
    %53 = vector.shape_cast %47 : vector<1x128xf32> to vector<1x128xf32>
    %54 = vector.broadcast %53 : vector<1x128xf32> to vector<2x128xf32>
    %55 = arith.select %50, %52, %54 : vector<2x128xi1>, vector<2x128xf32>
    %c0_17 = arith.constant 0 : index
    %c0_18 = arith.constant 0 : index
    %56 = vector.load %arg4[%c0_17, %c0_18] : memref<2x128xf32, #tpu.memory_space<vmem>>, vector<2x128xf32>
    tpu.vector_store %arg4[%c0_17, %c0_18], %55 {strides = array<i32>} : memref<2x128xf32, #tpu.memory_space<vmem>>, vector<2x128xf32>,
    return
  }
  func.func @transform_0(%arg0: i32) -> (i32, i32) {
    %c0_i32 = arith.constant 0 : i32
    %c0_i32_0 = arith.constant 0 : i32
    %c0_i32_1 = arith.constant 0 : i32
    return %c0_i32, %c0_i32_0 : i32, i32
  }
  func.func @transform_1(%arg0: i32) -> (i32, i32) {
    %c0_i32 = arith.constant 0 : i32
    %c0_i32_0 = arith.constant 0 : i32
    return %arg0, %c0_i32 : i32, i32
  }
  func.func @transform_2(%arg0: i32) -> (i32, i32) {
    %c0_i32 = arith.constant 0 : i32
    %c0_i32_0 = arith.constant 0 : i32
    return %c0_i32, %arg0 : i32, i32
  }
  func.func @transform_3(%arg0: i32) -> (i32, i32) {
    %c0_i32 = arith.constant 0 : i32
    %c0_i32_0 = arith.constant 0 : i32
    return %c0_i32, %arg0 : i32, i32
  }
}

</mosaic_0001>

<bundles_post_ra>
// kernel: csq_loss.1
= control target key start
LH: loop header
LB: loop body
LE: loop exit
PB: predicated region body
PF: predicated region fallthrough
CT: control target
= control target key end

     0   :  { %v63_v0 = vlaneseq  ;;  %vm76_vm0 = vcmask 64512   ;;  %v330_v8 = vmov 1.0   ;;  %s443_s1 = inlined_call_operand.vmem [shape: f32[8,32], index: 1, kind: input, shape index: {}]   ;;  %s444_s2 = inlined_call_operand.vmem [shape: s32[1,8], index: 2, kind: input, shape index: {}]   ;;  %s445_s0 = inlined_call_operand.vmem [shape: f32[32,8], index: 0, kind: input, shape index: {}]   ;;  %s446_s3 = inlined_call_operand.vmem [shape: f32[2,128], index: 3, kind: output, shape index: {}]  }
   0x1   :  { %v14_v1 = vld [vmem:[%s443_s1] sm:$0xff]  ;;  %v74_v5 = vld [vmem:[%s445_s0 + $0x10] sm:$0xff]  ;;  %v15_v6 = vld [vmem:[%s443_s1 + $0x8] sm:$0xff] }
   0x2   :  { %v283_v2 = vld [vmem:[%s444_s2] ss:$0 sm:$0xff]  ;;  %30 = vxpose.xlu0.b32.start [1/16] (narrow) %v14_v1, 32  ;;  %v358_v3 = vshrl.u32 %v63_v0, 7  ;;  %300 = vmatprep.mubr.msk.f32.mxu1 %vm76_vm0, %v74_v5  ;;  %v73_v7 = vld [vmem:[%s445_s0 + $0x8] sm:$0xff]  ;;  %v75_v9 = vld [vmem:[%s445_s0 + $0x18] sm:$0xff] }
   0x3   :  { %v72_v4 = vld [vmem:[%s445_s0] sm:$0xff]  ;;  %v16_v10 = vld [vmem:[%s443_s1 + $0x10] sm:$0xff]  ;;  %v17_v11 = vld [vmem:[%s443_s1 + $0x18] sm:$0xff] }
   0x4   :  { %297 = vmatprep.mubr.msk.f32.mxu0 %vm76_vm0, %v72_v4  ;;  %vm69_vm1 = vcmp.eq.s32.totalorder %v358_v3, %v283_v2  ;;  %v18_v12 = vld [vmem:[%s443_s1 + $0x20] sm:$0xff]  ;;  %v19_v13 = vld [vmem:[%s443_s1 + $0x28] sm:$0xff]  ;;  %v20_v14 = vld [vmem:[%s443_s1 + $0x30] sm:$0xff]  ;;  %vm276_vm3 = vcmp.eq.s32.totalorder %v358_v3, 0 }
   0x5   :  { %295 = vmatprep.subr.msk.mxu0 %vm69_vm1, %v330_v8  ;;  %303 = vmatprep.subr.msk.mxu1 %vm69_vm1, %v330_v8  ;;  %v21_v15 = vld [vmem:[%s443_s1 + $0x38] sm:$0xff]  ;;  %v22_v16 = vld [vmem:[%s443_s1 + $0x40] sm:$0xff]  ;;  %v23_v17 = vld [vmem:[%s443_s1 + $0x48] sm:$0xff] }
   0x6   :  { %31 = vxpose.xlu0.b32.cont [2/16] (narrow) %v15_v6, 32  ;;  %296 = vmatpush3.msk.msra.mxu0 %vm69_vm1, %v330_v8  ;;  %v24_v18 = vld [vmem:[%s443_s1 + $0x50] sm:$0xff]  ;;  %v25_v19 = vld [vmem:[%s443_s1 + $0x58] sm:$0xff]  ;;  %v26_v20 = vld [vmem:[%s443_s1 + $0x60] sm:$0xff] }
   0x7   :  { %304 = vmatpush3.msk.msra.mxu1 %vm69_vm1, %v330_v8  ;;  %298 = vmatmul.mubr.msk.f32.vlgmr.msra.gmra.mrb[0].mxu0 %vm76_vm0, %v73_v7  ;;  %v27_v21 = vld [vmem:[%s443_s1 + $0x68] sm:$0xff]  ;;  %v28_v22 = vld [vmem:[%s443_s1 + $0x70] sm:$0xff]  ;;  %v29_v23 = vld [vmem:[%s443_s1 + $0x78] sm:$0xff] }
   0x8   :  { %301 = vmatmul.mubr.msk.f32.vlgmr.msra.gmra.mrb[0].mxu1 %vm76_vm0, %v75_v9 }
   0xa   :  { %32 = vxpose.xlu0.b32.cont [3/16] (narrow) %v16_v10, 32 }
   0xe   :  { %33 = vxpose.xlu0.b32.cont [4/16] (narrow) %v17_v11, 32 }
  0x12   :  { %34 = vxpose.xlu0.b32.cont [5/16] (narrow) %v18_v12, 32 }
  0x16   :  { %35 = vxpose.xlu0.b32.cont [6/16] (narrow) %v19_v13, 32 }
  0x1a   :  { %36 = vxpose.xlu0.b32.cont [7/16] (narrow) %v20_v14, 32 }
  0x1e   :  { %37 = vxpose.xlu0.b32.cont [8/16] (narrow) %v21_v15, 32 }
  0x22   :  { %38 = vxpose.xlu0.b32.cont [9/16] (narrow) %v22_v16, 32 }
  0x26   :  { %39 = vxpose.xlu0.b32.cont [10/16] (narrow) %v23_v17, 32 }
  0x2a   :  { %40 = vxpose.xlu0.b32.cont [11/16] (narrow) %v24_v18, 32 }
  0x2e   :  { %41 = vxpose.xlu0.b32.cont [12/16] (narrow) %v25_v19, 32 }
  0x32   :  { %42 = vxpose.xlu0.b32.cont [13/16] (narrow) %v26_v20, 32 }
  0x36   :  { %43 = vxpose.xlu0.b32.cont [14/16] (narrow) %v27_v21, 32 }
  0x3a   :  { %44 = vxpose.xlu0.b32.cont [15/16] (narrow) %v28_v22, 32 }
  0x3e   :  { %45 = vxpose.xlu0.b32.end [16/16] (narrow) %v29_v23, 32 }
  0x82   :  { %v422_v24 = vpop.trf.xlu0 }
  0x83   :  { %v174_v25 = vand.u32 2147483647, %v422_v24 }
  0x85   :  { %v178_v26 = vmul.f32 2.0, %v174_v25 }
  0x86   :  { %v425_v27 = vpop.trf.xlu0 }
  0x87   :  { %v175_v28 = vand.u32 2147483647, %v425_v27  ;;  %v182_v30 = vsub.f32 0.0, %v178_v26 }
  0x89   :  { %v179_v29 = vmul.f32 2.0, %v175_v28  ;;  %v186_v35 = vmul.f32 1.442695, %v182_v30 }
  0x8a   :  { %v428_v31 = vpop.trf.xlu0 }
  0x8b   :  { %v183_v32 = vsub.f32 0.0, %v179_v29  ;;  %v176_v33 = vand.u32 2147483647, %v428_v31  ;;  %306 = vpow2.f32 %v186_v35 }
  0x8d   :  { %v180_v34 = vmul.f32 2.0, %v176_v33  ;;  %v188_v37 = vmul.f32 1.442695, %v183_v32 }
  0x8e   :  { %v431_v36 = vpop.trf.xlu0 }
  0x8f   :  { %v184_v38 = vsub.f32 0.0, %v180_v34  ;;  %v177_v39 = vand.u32 2147483647, %v431_v36  ;;  %308 = vpow2.f32 %v188_v37 }
  0x91   :  { %v181_v40 = vmul.f32 2.0, %v177_v39  ;;  %v190_v41 = vmul.f32 1.442695, %v184_v38 }
  0x93   :  { %v185_v42 = vsub.f32 0.0, %v181_v40  ;;  %310 = vpow2.f32 %v190_v41 }
  0x95   :  { %v192_v43 = vmul.f32 1.442695, %v185_v42  ;;  %v307_v44 = vpop.eup %306 }
  0x96   :  { %v194_v46 = vadd.f32 1.0, %v307_v44 }
  0x97   :  { %312 = vpow2.f32 %v192_v43 }
  0x98   :  { %314 = vlog2.f32 %v194_v46 }
  0x99   :  { %v309_v45 = vpop.eup %308 }
  0x9a   :  { %v195_v47 = vadd.f32 1.0, %v309_v45 }
  0x9c   :  { %316 = vlog2.f32 %v195_v47 }
  0x9d   :  { %v311_v48 = vpop.eup %310 }
  0x9e   :  { %v196_v50 = vadd.f32 1.0, %v311_v48 }
  0xa0   :  { %318 = vlog2.f32 %v196_v50 }
  0xa1   :  { %v313_v49 = vpop.eup %312 }
  0xa2   :  { %v197_v51 = vadd.f32 1.0, %v313_v49  ;;  %v315_v52 = vpop.eup %314 }
  0xa3   :  { %v199_v54 = vmul.f32 0.6931472, %v315_v52 }
  0xa4   :  { %320 = vlog2.f32 %v197_v51 }
  0xa5   :  { %v226_v58 = vadd.f32 %v199_v54, %v178_v26 }
  0xa6   :  { %v317_v53 = vpop.eup %316 }
  0xa7   :  { %v201_v55 = vmul.f32 0.6931472, %v317_v53  ;;  %v230_v62 = vsub.f32 0.0, %v226_v58 }
  0xa9   :  { %v227_v59 = vadd.f32 %v201_v55, %v179_v29  ;;  %v234_v4 = vmul.f32 1.442695, %v230_v62 }
  0xaa   :  { %v319_v56 = vpop.eup %318 }
  0xab   :  { %v203_v60 = vmul.f32 0.6931472, %v319_v56  ;;  %v231_v63 = vsub.f32 0.0, %v227_v59  ;;  %322 = vpow2.f32 %v234_v4 }
  0xad   :  { %v228_v1 = vadd.f32 %v203_v60, %v180_v34  ;;  %v236_v5 = vmul.f32 1.442695, %v231_v63 }
  0xae   :  { %v321_v57 = vpop.eup %320 }
  0xaf   :  { %v205_v61 = vmul.f32 0.6931472, %v321_v57  ;;  %v232_v6 = vsub.f32 0.0, %v228_v1  ;;  %324 = vpow2.f32 %v236_v5 }
  0xb1   :  { %v229_v2 = vadd.f32 %v205_v61, %v181_v40  ;;  %v238_v8 = vmul.f32 1.442695, %v232_v6 }
  0xb3   :  { %v233_v7 = vsub.f32 0.0, %v229_v2  ;;  %326 = vpow2.f32 %v238_v8 }
  0xb5   :  { %v240_v9 = vmul.f32 1.442695, %v233_v7  ;;  %v323_v10 = vpop.eup %322 }
  0xb6   :  { %v242_v12 = vmul.f32 2.0, %v323_v10 }
  0xb7   :  { %328 = vpow2.f32 %v240_v9 }
  0xb8   :  { %v246_v16 = vmul.f32 %v242_v12, %v242_v12 }
  0xb9   :  { %v325_v11 = vpop.eup %324 }
  0xba   :  { %v243_v13 = vmul.f32 2.0, %v325_v11 }
  0xbc   :  { %v247_v17 = vmul.f32 %v243_v13, %v243_v13 }
  0xbd   :  { %v327_v14 = vpop.eup %326 }
  0xbe   :  { %v244_v18 = vmul.f32 2.0, %v327_v14  ;;  %v259_v20 = vadd.f32 %v247_v17, %v246_v16 }
  0xc0   :  { %v248_v21 = vmul.f32 %v244_v18, %v244_v18 }
  0xc1   :  { %v329_v15 = vpop.eup %328 }
  0xc2   :  { %v245_v19 = vmul.f32 2.0, %v329_v15  ;;  %v260_v23 = vadd.f32 %v259_v20, %v248_v21 }
  0xc4   :  { %v249_v22 = vmul.f32 %v245_v19, %v245_v19 }
  0xc6   :  { %v261_v30 = vadd.f32 %v260_v23, %v249_v22 }
  0xc8   :  { %v262_v42 = vrot.slane %v261_v30, 4 }
  0xca   :  { %v263_v49 = vadd.f32 %v262_v42, %v261_v30 }
  0xcc   :  { %v264_v52 = vrot.slane %v263_v49, 2 }
  0xce   :  { %v265_v57 = vadd.f32 %v264_v52, %v263_v49 }
  0xd0   :  { %v266_v62 = vrot.slane %v265_v57, 1 }
  0xda   :  { %v299_v25 = vpop.f32.mrb[0].mxu0 }
  0xdb   :  { %v207_v26 = vmul.f32 %v299_v25, %v425_v27  ;;  %v302_v28 = vpop.f32.mrb[0].mxu1  ;;  %v155_v29 = vpop.f32.mrb[1].mxu0 }
  0xdc   :  { %v209_v32 = vmul.f32 %v302_v28, %v431_v36  ;;  %v206_v33 = vmul.f32 %v155_v29, %v422_v24  ;;  %v165_v34 = vpop.f32.mrb[1].mxu1 }
  0xdd   :  { %v211_v35 = vmul.f32 -2.0, %v207_v26  ;;  %v208_v37 = vmul.f32 %v165_v34, %v428_v31 }
  0xde   :  { %v213_v38 = vmul.f32 -2.0, %v209_v32  ;;  %v210_v39 = vmul.f32 -2.0, %v206_v33 }
  0xdf   :  { %v215_v40 = vmax.f32 %v211_v35, 0.0  ;;  %v212_v41 = vmul.f32 -2.0, %v208_v37 }
  0xe0   :  { %v217_v43 = vmax.f32 %v213_v38, 0.0  ;;  %v214_v44 = vmax.f32 %v210_v39, 0.0 }
  0xe1   :  { %v219_v45 = vadd.f32 %v215_v40, %v201_v55  ;;  %v216_v27 = vmax.f32 %v212_v41, 0.0  ;;  %v270_v55 = vand.u32 127, %v63_v0 }
  0xe2   :  { %v218_v46 = vadd.f32 %v214_v44, %v199_v54  ;;  %v221_v36 = vadd.f32 %v217_v43, %v205_v61  ;;  %v267_v54 = vadd.f32 %v266_v62, %v265_v57 }
  0xe3   :  { %v223_v47 = vmin.f32 %v219_v45, 100.0  ;;  %v220_v48 = vadd.f32 %v216_v27, %v203_v60  ;;  %vm273_vm2 = vcmp.lt.s32.totalorder %v270_v55, 8 }
  0xe4   :  { %v222_v50 = vmin.f32 %v218_v46, 100.0  ;;  %v225_v53 = vmin.f32 %v221_v36, 100.0  ;;  %v275_v61 = vsel %vm273_vm2, %v267_v54, 0.0 }
  0xe5   :  { %v224_v51 = vmin.f32 %v220_v48, 100.0 }
  0xe6   :  { %v250_v24 = vadd.f32 %v223_v47, %v222_v50 }
  0xe8   :  { %v251_v31 = vadd.f32 %v250_v24, %v224_v51 }
  0xea   :  { %v252_v56 = vadd.f32 %v251_v31, %v225_v53 }
  0xec   :  { %v253_v58 = vrot.slane %v252_v56, 4 }
  0xee   :  { %v254_v59 = vadd.f32 %v253_v58, %v252_v56 }
  0xf0   :  { %v255_v63 = vrot.slane %v254_v59, 2 }
  0xf2   :  { %v256_v1 = vadd.f32 %v255_v63, %v254_v59 }
  0xf4   :  { %v257_v2 = vrot.slane %v256_v1, 1 }
  0xf6   :  { %v258_v60 = vadd.f32 %v257_v2, %v256_v1 }
  0xf8   :  { %v274_v4 = vsel %vm273_vm2, %v258_v60, 0.0 }
  0xf9   :  { %v277_v5 = vsel %vm276_vm3, %v274_v4, %v275_v61 }
  0xfa   :  { %278 = vst [vmem:[%s446_s3] sm:$0x3] %v277_v5 }

</bundles_post_ra>
